<compile_context>
chip_gen: v7x
topology: tpu7x:2x2x1
jax: 0.10.0
libtpu: 0.0.40
codegen_flags: <defaults>
</compile_context>

<pallas_src>
import functools

import jax
import jax.numpy as jnp
from jax.experimental import pallas as pl
from jax.experimental.pallas import tpu as pltpu


# ----------------------------- helpers --------------------------------------
def _round_up(x, m):
    return -(-x // m) * m


def _choose_tiling(n_mus, *, granule=16, tm_max=256):
    """Pick (m_pad, tm) for the batch dimension.

    Small batches: pad only to the bf16 sublane granule and run one grid step.
    Large batches: >= 2 tiles (v7x megacore) with the tile capped at tm_max.
    """
    m = _round_up(max(n_mus, 1), granule)
    if m < 128:
        return m, m                                     # single small tile
    tm = min(tm_max, _round_up(-(-m // 2), granule))    # >= 2 parallel tiles
    return _round_up(m, tm), tm


def _wants_bf16_tanh():
    """bf16 EUP tanh on v6e/v7x; f32 tanh on v5e (no bf16 EUP)."""
    try:
        kind = jax.devices()[0].device_kind.lower()
    except Exception:
        return True
    return not ("v5e" in kind or "v5 lite" in kind or "v5litepod" in kind)


# ----------------------------- Pallas kernel --------------------------------
def _decoder_kernel(x_ref, w1_ref, b1_ref, w2_ref, b2_ref, o_ref, *, bf16_tanh):
    """Fused conditional decoder:  tanh( tanh(x@W1 + b1) @ W2 + b2 ).

    x / W1 / W2 are bf16 (MXU-native); accumulation + bias adds in f32.
    The generator's fixed latent and the margin are already folded into
    b1 / W1 offline.
    """
    h = jnp.tanh(
        jnp.dot(x_ref[...], w1_ref[...], preferred_element_type=jnp.float32)
        + b1_ref[...]
    )
    o = (
        jnp.dot(h.astype(jnp.bfloat16), w2_ref[...],
                preferred_element_type=jnp.float32)
        + b2_ref[...]
    )
    if bf16_tanh:
        # v6e/v7x: packed bf16 EUP tanh (~2x) + bf16 store.
        o_ref[...] = jnp.tanh(o.astype(o_ref.dtype))
    else:
        # v5e: f32 tanh, cast only at the store.
        o_ref[...] = jnp.tanh(o).astype(o_ref.dtype)


def _decode_pallas(tm, bf16_tanh, x, w1, b1, w2, b2):
    """x: (M, K) bf16, M % tm == 0.  Returns (M, N) bf16."""
    m, k = x.shape
    hdim = w1.shape[1]
    n = w2.shape[1]
    assert m % tm == 0, (m, tm)
    kernel = functools.partial(_decoder_kernel, bf16_tanh=bf16_tanh)
    return pl.pallas_call(
        kernel,
        out_shape=jax.ShapeDtypeStruct((m, n), jnp.bfloat16),
        grid_spec=pltpu.PrefetchScalarGridSpec(
            num_scalar_prefetch=0,
            grid=(m // tm,),
            in_specs=[
                pl.BlockSpec((tm, k), lambda i: (i, 0)),     # conds (pipelined)
                pl.BlockSpec((k, hdim), lambda i: (0, 0)),   # W1  (resident)
                pl.BlockSpec((1, hdim), lambda i: (0, 0)),   # b1  (resident)
                pl.BlockSpec((hdim, n), lambda i: (0, 0)),   # W2  (resident)
                pl.BlockSpec((1, n), lambda i: (0, 0)),      # b2  (resident)
            ],
            out_specs=pl.BlockSpec((tm, n), lambda i: (i, 0)),  # lane-dense C*T
        ),
        compiler_params=pltpu.CompilerParams(
            # Batch tiles are independent -> shard across v7x's 2 TensorCores;
            # no-op on v5e/v6e (1 TC).
            dimension_semantics=("parallel",),
        ),
    )(x, w1, b1, w2, b2)


# ----- custom VJP so opt_params can be optimized with jax.grad --------------
@functools.partial(jax.custom_vjp, nondiff_argnums=(0, 1))
def _decode(tm, bf16_tanh, x, w1, b1, w2, b2):
    return _decode_pallas(tm, bf16_tanh, x, w1, b1, w2, b2)


def _decode_fwd(tm, bf16_tanh, x, w1, b1, w2, b2):
    out = _decode_pallas(tm, bf16_tanh, x, w1, b1, w2, b2)
    return out, (x, w1, b1, w2, b2)


def _decode_bwd(tm, bf16_tanh, res, g):
    # Pure-JAX f32 backward (recompute); the generator weights are frozen in
    # practice but real cotangents are returned for all array operands.
    x, w1, b1, w2, b2 = res
    xf = x.astype(jnp.float32)
    w1f = w1.astype(jnp.float32)
    w2f = w2.astype(jnp.float32)
    h = jnp.tanh(xf @ w1f + b1)
    y = jnp.tanh(h @ w2f + b2)
    gf = g.astype(jnp.float32)
    da2 = gf * (1.0 - y * y)
    db2 = jnp.sum(da2, axis=0, keepdims=True)
    dw2 = h.T @ da2
    dh = da2 @ w2f.T
    da1 = dh * (1.0 - h * h)
    db1 = jnp.sum(da1, axis=0, keepdims=True)
    dw1 = xf.T @ da1
    dx = da1 @ w1f.T
    return (dx.astype(x.dtype), dw1.astype(w1.dtype), db1.astype(b1.dtype),
            dw2.astype(w2.dtype), db2.astype(b2.dtype))


_decode.defvjp(_decode_fwd, _decode_bwd)


# --------------------------- module equivalent -------------------------------
class ConditionOptimizerLegacyJax:
    """JAX/Pallas equivalent of ConditionOptimizerLegacy.

    `biomime_params` + `zi` stand in for the frozen `biomime` MUAP generator;
    `opt_params` is the learnable condition tensor (nn.Parameter in PyTorch).
    """

    def __init__(self, biomime_params, zi, initial_input,
                 indices=(0, 1, 2, 3, 4, 5), margin=1.1,
                 tm_max=256, bf16_tanh=None):
        self.indices = jnp.asarray(indices, jnp.int32)
        self.margin = jnp.float32(margin)
        self._tm_max = int(tm_max)
        self._bf16_tanh = _wants_bf16_tanh() if bf16_tanh is None else bool(bf16_tanh)

        init = jnp.asarray(initial_input, jnp.float32)
        # nn.Parameter(initial_input[:, indices] / margin)
        self.opt_params = init[:, self.indices] / self.margin
        self.biomime_input = init

        # ---- frozen generator: fold latent zi and margin offline -----------
        w1 = jnp.asarray(biomime_params["w1"], jnp.float32)
        b1 = jnp.asarray(biomime_params["b1"], jnp.float32)
        w2 = jnp.asarray(biomime_params["w2"], jnp.float32)
        b2 = jnp.asarray(biomime_params["b2"], jnp.float32)
        zi = jnp.asarray(zi, jnp.float32)
        latent_dim = zi.shape[1]
        n_conds = w1.shape[0] - latent_dim
        # Pad the condition feature dim (6) up to a full bf16 sublane group
        # (16 rows per vreg); the extra rows are zero so the matmul is
        # unchanged and no pre-MXU relayout is needed.
        k_pad = _round_up(max(n_conds, 1), 16)
        # (conds * margin) @ W1_c == conds @ (margin * W1_c): fold the margin.
        w1_c = jnp.pad(w1[latent_dim:] * float(margin),
                       ((0, k_pad - n_conds), (0, 0)))

        self._n_conds = n_conds
        self._k_pad = k_pad
        self._out_ct = tuple(biomime_params["out_ct"])
        self._w1 = w1_c.astype(jnp.bfloat16)                         # (k_pad, H)
        self._b1 = (b1 + zi @ w1[:latent_dim]).astype(jnp.float32)   # (1, H)
        self._w2 = w2.astype(jnp.bfloat16)                           # (H, C*T)
        self._b2 = b2.astype(jnp.float32)                            # (1, C*T)

    def get_conditions(self):
        return self.opt_params * self.margin

    def _biomime_sample(self, conds):
        n_mus = conds.shape[0]
        m_pad, tm = _choose_tiling(n_mus, tm_max=self._tm_max)
        # Single pad op builds the (m_pad, k_pad) bf16 tile (margin already in W1).
        x = jnp.pad(conds.astype(jnp.bfloat16),
                    ((0, m_pad - n_mus), (0, self._k_pad - self._n_conds)))
        out_flat = _decode(tm, self._bf16_tanh, x,
                           self._w1, self._b1, self._w2, self._b2)
        c, t = self._out_ct
        return out_flat[:n_mus].reshape(n_mus, c, t)

    def apply(self, opt_params):
        """Forward pass as a pure function of the learnable conditions
        (differentiable via jax.grad thanks to the custom VJP)."""
        # 1. copy biomime_input  2. overwrite learnable indices
        #    (margin is folded into W1; tiny (n_mus, 6) glue stays plain JAX).
        conds = self.biomime_input.at[:, self.indices].set(opt_params)
        return self._biomime_sample(conds)

    def __call__(self, n_mus=None):
        # `n_mus` is accepted for signature parity with the PyTorch module
        # but, as there, is not used.
        return self.apply(self.opt_params)


# ------------------------------- main ----------------------------------------
if __name__ == "__main__":
    # Small, BioMime-flavoured shapes.
    n_mus = 8          # number of motor units (batch)
    n_conds = 6        # 6 physiological conditions
    latent_dim = 16
    hidden_dim = 128
    out_c, out_t = 16, 32          # generator output (n_mus, C, T)
    out_dim = out_c * out_t        # 512 -> lane-dense multiple of 128
    margin = 1.1

    key = jax.random.PRNGKey(0)
    k_zi, k_init, k_w1, k_b1, k_w2, k_b2 = jax.random.split(key, 6)

    in_dim = latent_dim + n_conds
    biomime_params = {
        "w1": jax.random.normal(k_w1, (in_dim, hidden_dim), jnp.float32)
        * (1.0 / jnp.sqrt(in_dim)),
        "b1": jax.random.normal(k_b1, (1, hidden_dim), jnp.float32) * 0.01,
        "w2": jax.random.normal(k_w2, (hidden_dim, out_dim), jnp.float32)
        * (1.0 / jnp.sqrt(hidden_dim)),
        "b2": jax.random.normal(k_b2, (1, out_dim), jnp.float32) * 0.01,
        "out_ct": (out_c, out_t),
    }
    # Fixed latent carried by the generator (folded into b1 at init).
    zi = jax.random.normal(k_zi, (1, latent_dim), jnp.float32)

    # Initial conditions in [0, 1] (normalized physiological parameters).
    initial_input = jax.random.uniform(k_init, (n_mus, n_conds), jnp.float32)

    model = ConditionOptimizerLegacyJax(
        biomime_params, zi, initial_input,
        indices=(0, 1, 2, 3, 4, 5), margin=margin)

    out = model(n_mus)
    out = jax.block_until_ready(out)

    # ---- pure-JAX f32 reference of the same forward pass --------------------
    opt_params_ref = initial_input[:, :n_conds] / margin
    conds_ref = initial_input.at[:, :n_conds].set(opt_params_ref) * margin
    x_ref = jnp.concatenate([jnp.tile(zi, (n_mus, 1)), conds_ref], axis=1)
    ref = jnp.tanh(
        jnp.tanh(x_ref @ biomime_params["w1"] + biomime_params["b1"])
        @ biomime_params["w2"] + biomime_params["b2"]
    ).reshape(n_mus, out_c, out_t)

    assert out.shape == (n_mus, out_c, out_t), out.shape
    # bf16 matmul operands + bf16 output -> relaxed tolerance vs f32 reference.
    assert jnp.allclose(out.astype(jnp.float32), ref, atol=3e-2, rtol=3e-2), \
        "mismatch vs reference"
    assert jnp.allclose(model.get_conditions(), initial_input, atol=1e-5)

    # ---- gradient smoke test (the module exists to optimize opt_params) -----
    def loss_fn(p):
        return jnp.sum(model.apply(p).astype(jnp.float32))

    grad = jax.block_until_ready(jax.grad(loss_fn)(model.opt_params))
    assert grad.shape == model.opt_params.shape, grad.shape
    assert bool(jnp.all(jnp.isfinite(grad))), "non-finite gradient"

    print("KERNEL_OK")
</pallas_src>

<mosaic_0001>
module attributes {stable_mosaic.version = 11 : i64} {
  func.func @_decoder_kernel(%arg0: i32, %arg1: memref<16x16xbf16, #tpu.memory_space<vmem>>, %arg2: memref<16x128xbf16, #tpu.memory_space<vmem>>, %arg3: memref<1x128xf32, #tpu.memory_space<vmem>>, %arg4: memref<128x512xbf16, #tpu.memory_space<vmem>>, %arg5: memref<1x512xf32, #tpu.memory_space<vmem>>, %arg6: memref<16x512xbf16, #tpu.memory_space<vmem>>) attributes {dimension_semantics = [#tpu.dimension_semantics<parallel>], iteration_bounds = array<i64: 1>, scalar_prefetch = 0 : i64, scratch_operands = 0 : i64, tpu.core_type = #tpu.core_type<tc>, window_params = [{transform_indices = @transform_0, window_bounds = array<i64: 16, 16>}, {pipeline_mode = #tpu.pipeline_mode<synchronous>, transform_indices = @transform_1, window_bounds = array<i64: 16, 128>}, {pipeline_mode = #tpu.pipeline_mode<synchronous>, transform_indices = @transform_2, window_bounds = array<i64: 1, 128>}, {pipeline_mode = #tpu.pipeline_mode<synchronous>, transform_indices = @transform_3, window_bounds = array<i64: 128, 512>}, {pipeline_mode = #tpu.pipeline_mode<synchronous>, transform_indices = @transform_4, window_bounds = array<i64: 1, 512>}, {transform_indices = @transform_5, window_bounds = array<i64: 16, 512>}]} {
    %c0 = arith.constant 0 : index
    %c0_0 = arith.constant 0 : index
    %0 = vector.load %arg1[%c0, %c0_0] : memref<16x16xbf16, #tpu.memory_space<vmem>>, vector<16x16xbf16>
    %c0_1 = arith.constant 0 : index
    %c0_2 = arith.constant 0 : index
    %1 = vector.load %arg2[%c0_1, %c0_2] : memref<16x128xbf16, #tpu.memory_space<vmem>>, vector<16x128xbf16>
    %cst = arith.constant dense<0.000000e+00> : vector<16x128xf32>
    %2 = tpu.matmul %0, %1, %cst {dimension_numbers = #tpu.dot_dimension_numbers<[1], [0], [0], [1], [0, 0, 1, 1], [], []>} : vector<16x16xbf16>, vector<16x128xbf16>, vector<16x128xf32> -> vector<16x128xf32>
    %c0_3 = arith.constant 0 : index
    %c0_4 = arith.constant 0 : index
    %3 = vector.load %arg3[%c0_3, %c0_4] : memref<1x128xf32, #tpu.memory_space<vmem>>, vector<1x128xf32>
    %4 = vector.broadcast %3 : vector<1x128xf32> to vector<16x128xf32>
    %5 = arith.addf %2, %4 : vector<16x128xf32>
    %6 = math.tanh %5 : vector<16x128xf32>
    %7 = arith.truncf %6 : vector<16x128xf32> to vector<16x128xbf16>
    %c0_5 = arith.constant 0 : index
    %c0_6 = arith.constant 0 : index
    %8 = vector.load %arg4[%c0_5, %c0_6] : memref<128x512xbf16, #tpu.memory_space<vmem>>, vector<128x512xbf16>
    %cst_7 = arith.constant dense<0.000000e+00> : vector<16x512xf32>
    %9 = tpu.matmul %7, %8, %cst_7 {dimension_numbers = #tpu.dot_dimension_numbers<[1], [0], [0], [1], [0, 0, 1, 1], [], []>} : vector<16x128xbf16>, vector<128x512xbf16>, vector<16x512xf32> -> vector<16x512xf32>
    %c0_8 = arith.constant 0 : index
    %c0_9 = arith.constant 0 : index
    %10 = vector.load %arg5[%c0_8, %c0_9] : memref<1x512xf32, #tpu.memory_space<vmem>>, vector<1x512xf32>
    %11 = vector.broadcast %10 : vector<1x512xf32> to vector<16x512xf32>
    %12 = arith.addf %9, %11 : vector<16x512xf32>
    %13 = arith.truncf %12 : vector<16x512xf32> to vector<16x512xbf16>
    %14 = math.tanh %13 : vector<16x512xbf16>
    %c0_10 = arith.constant 0 : index
    %c0_11 = arith.constant 0 : index
    %15 = vector.load %arg6[%c0_10, %c0_11] : memref<16x512xbf16, #tpu.memory_space<vmem>>, vector<16x512xbf16>
    tpu.vector_store %arg6[%c0_10, %c0_11], %14 {strides = array<i32>} : memref<16x512xbf16, #tpu.memory_space<vmem>>, vector<16x512xbf16>,
    return
  }
  func.func @transform_0(%arg0: i32) -> (i32, i32) {
    %c0_i32 = arith.constant 0 : i32
    %c0_i32_0 = arith.constant 0 : i32
    return %arg0, %c0_i32 : i32, i32
  }
  func.func @transform_1(%arg0: i32) -> (i32, i32) {
    %c0_i32 = arith.constant 0 : i32
    %c0_i32_0 = arith.constant 0 : i32
    %c0_i32_1 = arith.constant 0 : i32
    return %c0_i32, %c0_i32_0 : i32, i32
  }
  func.func @transform_2(%arg0: i32) -> (i32, i32) {
    %c0_i32 = arith.constant 0 : i32
    %c0_i32_0 = arith.constant 0 : i32
    %c0_i32_1 = arith.constant 0 : i32
    return %c0_i32, %c0_i32_0 : i32, i32
  }
  func.func @transform_3(%arg0: i32) -> (i32, i32) {
    %c0_i32 = arith.constant 0 : i32
    %c0_i32_0 = arith.constant 0 : i32
    %c0_i32_1 = arith.constant 0 : i32
    return %c0_i32, %c0_i32_0 : i32, i32
  }
  func.func @transform_4(%arg0: i32) -> (i32, i32) {
    %c0_i32 = arith.constant 0 : i32
    %c0_i32_0 = arith.constant 0 : i32
    %c0_i32_1 = arith.constant 0 : i32
    return %c0_i32, %c0_i32_0 : i32, i32
  }
  func.func @transform_5(%arg0: i32) -> (i32, i32) {
    %c0_i32 = arith.constant 0 : i32
    %c0_i32_0 = arith.constant 0 : i32
    return %arg0, %c0_i32 : i32, i32
  }
}

</mosaic_0001>

<bundles_post_ra>
// kernel: tpu_custom_call.1
= control target key start
LH: loop header
LB: loop body
LE: loop exit
PB: predicated region body
PF: predicated region fallthrough
CT: control target
= control target key end

     0   :  { %10 = vsyncpa [#allocation3], 0  ;;  %s806_s0 = inlined_call_operand.hbm [shape: bf16[16,16], index: 0, kind: input, shape index: {}]   ;;  %s807_s1 = inlined_call_operand.hbm [shape: bf16[16,128], index: 1, kind: input, shape index: {}]   ;;  %s808_s2 = inlined_call_operand.vmem [shape: f32[1,128], index: 2, kind: input, shape index: {}]   ;;  %s809_s3 = inlined_call_operand.hbm [shape: bf16[128,512], index: 3, kind: input, shape index: {}]   ;;  %s810_s4 = inlined_call_operand.vmem [shape: f32[1,512], index: 4, kind: input, shape index: {}]   ;;  %s811_s5 = inlined_call_operand.hbm [shape: bf16[16,512], index: 5, kind: output, shape index: {}]  }
   0x1   :  { %11 = vsyncpa [#allocation6], 0 }
   0x2   :  { %12 = vsyncpa [#allocation4], 0  ;;  %s698_s18 = smov [#allocation5]   ;;  %s699_s20 = smov [#allocation2]  }
   0x3   :  { %s30_s19 = sshll.u32 %s698_s18, 4  ;;  %s18_s21 = sshll.u32 %s699_s20, 4  ;;  %s31_s19 = int_to_ptr.vmem [resolvable:$true] %s30_s19  ;;  %s739_s21 = int_to_ptr.vmem [resolvable:$true] %s18_s21 }
   0x4   :  { %s604_s24 = scalar_lea.hbm %s807_s1, 128 }
   0x5   :  { %p605_p0 = scmp.ne.s32.totalorder %s807_s1, %s604_s24  ;;  %p608_p1 = scmp.lt.u32.totalorder %s604_s24, %s807_s1 }
   0x7   :  { %p610_p2 = pnand %p608_p1, %p605_p0 }
   0x9   :  { %613 = shalt.err (!%p610_p2)
}
   0xa   :  { %s614_s29 = scalar_lea.vmem %s31_s19, 128  ;;  %p619_p4 = scmp.lt.s32.totalorder %s31_s19, %s31_s19 }
   0xb   :  { %p615_p3 = scmp.ne.s32.totalorder %s31_s19, %s614_s29  ;;  %p620_p5 = scmp.lt.s32.totalorder %s614_s29, %s614_s29 }
   0xd   :  { %p621_p6 = por %p620_p5, %p619_p4 }
   0xf   :  { %p622_p7 = pnand %p621_p6, %p615_p3 }
  0x11   :  { %625 = shalt.err (!%p622_p7)
}
  0x12   :  { %s700_s30 = smov 64   ;;  %s701_s6 = smov 4  }
  0x13   :  { %36 = dma.hbm_to_vmem [thread:$0]  %s807_s1, 128, %s31_s19, [#allocation6], %s700_s30, %s700_s30, %s701_s6  }
  0x14   :  { %s626_s11 = scalar_lea.hbm %s806_s0, 128 }
  0x15   :  { %p627_p8 = scmp.ne.s32.totalorder %s806_s0, %s626_s11  ;;  %p630_p9 = scmp.lt.u32.totalorder %s626_s11, %s806_s0 }
  0x17   :  { %p632_p10 = pnand %p630_p9, %p627_p8 }
  0x19   :  { %635 = shalt.err (!%p632_p10)
}
  0x1a   :  { %s636_s16 = scalar_lea.vmem %s739_s21, 128  ;;  %p641_p12 = scmp.lt.s32.totalorder %s739_s21, %s739_s21 }
  0x1b   :  { %p637_p11 = scmp.ne.s32.totalorder %s739_s21, %s636_s16  ;;  %p642_p13 = scmp.lt.s32.totalorder %s636_s16, %s636_s16 }
  0x1d   :  { %p643_p0 = por %p642_p13, %p641_p12 }
  0x1f   :  { %p644_p1 = pnand %p643_p0, %p637_p11 }
  0x21   :  { %647 = shalt.err (!%p644_p1)
}
  0x22   :  { %24 = dma.hbm_to_vmem [thread:$0]  %s806_s0, 128, %s739_s21, [#allocation3], %s700_s30, %s700_s30, %s701_s6  }
  0x23   :  { %s702_s18 = smov [#allocation7]   ;;  %s648_s23 = scalar_lea.hbm %s809_s3, 4096 }
  0x24   :  { %s44_s19 = sshll.u32 %s702_s18, 4  ;;  %p649_p2 = scmp.ne.s32.totalorder %s809_s3, %s648_s23  ;;  %s45_s19 = int_to_ptr.vmem [resolvable:$true] %s44_s19 }
  0x25   :  { %p652_p3 = scmp.lt.u32.totalorder %s648_s23, %s809_s3 }
  0x27   :  { %p654_p4 = pnand %p652_p3, %p649_p2 }
  0x29   :  { %657 = shalt.err (!%p654_p4)
}
  0x2a   :  { %s658_s28 = scalar_lea.vmem %s45_s19, 4096  ;;  %p663_p6 = scmp.lt.s32.totalorder %s45_s19, %s45_s19 }
  0x2b   :  { %p659_p5 = scmp.ne.s32.totalorder %s45_s19, %s658_s28  ;;  %p664_p7 = scmp.lt.s32.totalorder %s658_s28, %s658_s28 }
  0x2d   :  { %p665_p8 = por %p664_p7, %p663_p6 }
  0x2f   :  { %p666_p9 = pnand %p665_p8, %p659_p5 }
  0x31   :  { %669 = shalt.err (!%p666_p9)
}
  0x32   :  { %s703_s0 = smov 256   ;;  %s704_s21 = smov 16  }
  0x33   :  { %50 = dma.hbm_to_vmem [thread:$0]  %s809_s3, 4096, %s45_s19, [#allocation6], %s703_s0, %s703_s0, %s704_s21  }
  0x34   :  { %692 = dma.done.wait [#allocation3], 128  }
  0x35   :  { %693 = vsyncadd [#allocation3], 4294967168 }
  0x36   :  { %694 = dma.done.wait [#allocation6], 4224  }
  0x37   :  { %695 = vsyncadd [#allocation6], 4294963072  ;;  %v705_v0 = vmov 0.0   ;;  %vm706_vm0 = vmmov 0   ;;  %v542_v1 = vld [vmem:[#allocation5] sm:$0xff]   ;;  %v543_v2 = vld [vmem:[#allocation2] sm:$0xff]   ;;  %v167_v46 = vlaneseq }
  0x38   :  { %525 = vmatprep.subr.bf16.mxu0 %v705_v0  ;;  %527 = vmatprep.mubr.msk.bf16.mxu0 %vm706_vm0, %v705_v0  ;;  %vm85_vm1 = vcmask 130048   ;;  %v544_v3 = vld [vmem:[#allocation7 + $0x4] ss:$16 sps:$4 sm:$0xff]   ;;  %v546_v4 = vld [vmem:[#allocation7 + $0x8] ss:$16 sps:$4 sm:$0xff]   ;;  %v707_v33 = vmov 0  }
  0x39   :  { %526 = vmatpush3.bf16.msra.mxu0 %v542_v1  ;;  %347 = vmatprep.subr.bf16.mxu1 %v544_v3  ;;  %v548_v5 = vld [vmem:[#allocation7 + $0xc] ss:$16 sps:$4 sm:$0xff]   ;;  %v549_v6 = vld [vmem:[#allocation7] ss:$16 sps:$4 sm:$0xff]   ;;  %v550_v7 = vld [vmem:[#allocation7 + $0x24] ss:$16 sps:$4 sm:$0xff]  }
  0x3a   :  { %390 = vmatprep.subr.bf16.mxu0 %v548_v5  ;;  %348 = vmatpush1.bf16.msra.mxu1 %v549_v6  ;;  %v552_v8 = vld [vmem:[#allocation7 + $0x28] ss:$16 sps:$4 sm:$0xff]   ;;  %v554_v9 = vld [vmem:[#allocation7 + $0x2c] ss:$16 sps:$4 sm:$0xff]   ;;  %v555_v10 = vld [vmem:[#allocation7 + $0x20] ss:$16 sps:$4 sm:$0xff]  }
  0x3b   :  { %349 = vmatprep.subr.bf16.mxu1 %v550_v7  ;;  %v556_v11 = vld [vmem:[#allocation7 + $0x44] ss:$16 sps:$4 sm:$0xff]   ;;  %v558_v12 = vld [vmem:[#allocation7 + $0x48] ss:$16 sps:$4 sm:$0xff]   ;;  %v560_v13 = vld [vmem:[#allocation7 + $0x4c] ss:$16 sps:$4 sm:$0xff]   ;;  %379 = vmatprep.mubr.bf16.mxu1 %v707_v33 }
  0x3c   :  { %528 = vmatmul.mubr.msk.bf16.vlgmr.msra.gmra.mrb[0].mxu0 %vm85_vm1, %v543_v2  ;;  %v561_v14 = vld [vmem:[#allocation7 + $0x40] ss:$16 sps:$4 sm:$0xff]   ;;  %v562_v15 = vld [vmem:[#allocation7 + $0x64] ss:$16 sps:$4 sm:$0xff]   ;;  %v566_v16 = vld [vmem:[#allocation7 + $0x6c] ss:$16 sps:$4 sm:$0xff]  }
  0x3d   :  { %391 = vmatpush1.bf16.msra.mxu0 %v546_v4  ;;  %v567_v17 = vld [vmem:[#allocation7 + $0x60] ss:$16 sps:$4 sm:$0xff]   ;;  %v564_v18 = vld [vmem:[#allocation7 + $0x68] ss:$16 sps:$4 sm:$0xff]   ;;  %v568_v19 = vld [vmem:[#allocation7 + $0x84] ss:$16 sps:$4 sm:$0xff]   ;;  %422 = vmatprep.mubr.bf16.mxu0 %v707_v33 }
  0x3e   :  { %392 = vmatprep.subr.bf16.mxu0 %v554_v9  ;;  %350 = vmatpush1.bf16.msra.mxu1 %v555_v10  ;;  %v572_v20 = vld [vmem:[#allocation7 + $0x8c] ss:$16 sps:$4 sm:$0xff]   ;;  %v570_v21 = vld [vmem:[#allocation7 + $0x88] ss:$16 sps:$4 sm:$0xff]   ;;  %v573_v22 = vld [vmem:[#allocation7 + $0x80] ss:$16 sps:$4 sm:$0xff]  }
  0x3f   :  { %351 = vmatprep.subr.bf16.mxu1 %v556_v11  ;;  %v574_v23 = vld [vmem:[#allocation7 + $0xa4] ss:$16 sps:$4 sm:$0xff]   ;;  %v578_v24 = vld [vmem:[#allocation7 + $0xac] ss:$16 sps:$4 sm:$0xff]   ;;  %v576_v25 = vld [vmem:[#allocation7 + $0xa8] ss:$16 sps:$4 sm:$0xff]  }
  0x40   :  { %v579_v26 = vld [vmem:[#allocation7 + $0xa0] ss:$16 sps:$4 sm:$0xff]   ;;  %v580_v27 = vld [vmem:[#allocation7 + $0xc4] ss:$16 sps:$4 sm:$0xff]   ;;  %v584_v28 = vld [vmem:[#allocation7 + $0xcc] ss:$16 sps:$4 sm:$0xff]  }
  0x41   :  { %393 = vmatpush1.bf16.msra.mxu0 %v552_v8  ;;  %v582_v29 = vld [vmem:[#allocation7 + $0xc8] ss:$16 sps:$4 sm:$0xff]   ;;  %v585_v30 = vld [vmem:[#allocation7 + $0xc0] ss:$16 sps:$4 sm:$0xff]   ;;  %v586_v31 = vld [vmem:[#allocation7 + $0xe4] ss:$16 sps:$4 sm:$0xff]  }
  0x42   :  { %394 = vmatprep.subr.bf16.mxu0 %v560_v13  ;;  %352 = vmatpush1.bf16.msra.mxu1 %v561_v14  ;;  %v590_v32 = vld [vmem:[#allocation7 + $0xec] ss:$16 sps:$4 sm:$0xff]   ;;  %v588_v34 = vld [vmem:[#allocation7 + $0xe8] ss:$16 sps:$4 sm:$0xff]   ;;  %v591_v35 = vld [vmem:[#allocation7 + $0xe0] ss:$16 sps:$4 sm:$0xff]  }
  0x43   :  { %353 = vmatprep.subr.bf16.mxu1 %v562_v15  ;;  %v483_v36 = vld [vmem:[%s808_s2] ss:$0 sm:$0xff]  ;;  %v168_v47 = vshrl.u32 %v167_v46, 7  ;;  %s708_s2 = smov [#allocation8]  }
  0x44   :  { %v165_v50 = vld [vmem:[%s810_s4] sm:$0xf]  ;;  %s470_s4 = sshll.u32 %s708_s2, 4  ;;  %s471_s4 = int_to_ptr.vmem [resolvable:$true] %s470_s4 }
  0x45   :  { %395 = vmatpush1.bf16.msra.mxu0 %v558_v12  ;;  %v169_v48 = vsub.s32 0, %v168_v47  ;;  %v177_v49 = vsub.s32 2, %v168_v47  ;;  %v173_v51 = vsub.s32 1, %v168_v47  ;;  %v181_v52 = vsub.s32 3, %v168_v47  ;;  %s670_s9 = scalar_lea.vmem %s471_s4, 512  ;;  %p675_p11 = scmp.lt.s32.totalorder %s471_s4, %s471_s4 }
  0x46   :  { %396 = vmatprep.subr.bf16.mxu0 %v566_v16  ;;  %354 = vmatpush1.bf16.msra.mxu1 %v567_v17  ;;  %p671_p10 = scmp.ne.s32.totalorder %s471_s4, %s670_s9  ;;  %p676_p12 = scmp.lt.s32.totalorder %s670_s9, %s670_s9 }
  0x47   :  { %355 = vmatprep.subr.bf16.mxu1 %v568_v19  ;;  %v170_v53 = vrot.slane %v165_v50, %v169_v48  ;;  %v178_v54 = vrot.slane %v165_v50, %v177_v49  ;;  %v174_v57 = vrot.slane %v165_v50, %v173_v51  ;;  %v182_v58 = vrot.slane %v165_v50, %v181_v52 }
  0x48   :  { %p677_p13 = por %p676_p12, %p675_p11 }
  0x49   :  { %397 = vmatpush1.bf16.msra.mxu0 %v564_v18 }
  0x4a   :  { %398 = vmatprep.subr.bf16.mxu0 %v572_v20  ;;  %356 = vmatpush1.bf16.msra.mxu1 %v573_v22  ;;  %p678_p0 = pnand %p677_p13, %p671_p10 }
  0x4b   :  { %357 = vmatprep.subr.bf16.mxu1 %v574_v23 }
  0x4d   :  { %399 = vmatpush1.bf16.msra.mxu0 %v570_v21 }
  0x4e   :  { %400 = vmatprep.subr.bf16.mxu0 %v578_v24  ;;  %358 = vmatpush1.bf16.msra.mxu1 %v579_v26 }
  0x4f   :  { %359 = vmatprep.subr.bf16.mxu1 %v580_v27 }
  0x51   :  { %401 = vmatpush1.bf16.msra.mxu0 %v576_v25 }
  0x52   :  { %402 = vmatprep.subr.bf16.mxu0 %v584_v28  ;;  %360 = vmatpush1.bf16.msra.mxu1 %v585_v30 }
  0x53   :  { %361 = vmatprep.subr.bf16.mxu1 %v586_v31 }
  0x55   :  { %403 = vmatpush1.bf16.msra.mxu0 %v582_v29 }
  0x56   :  { %404 = vmatprep.subr.bf16.mxu0 %v590_v32  ;;  %362 = vmatpush1.bf16.msra.mxu1 %v591_v35 }
  0x59   :  { %405 = vmatpush1.bf16.msra.mxu0 %v588_v34 }
 0x10f   :  { %v123_v37 = vpop.f32.mrb[0].mxu0 }
 0x110   :  { %v124_v38 = vadd.f32 %v483_v36, %v123_v37  ;;  %v529_v39 = vpop.f32.mrb[1].mxu0 }
 0x111   :  { %v126_v40 = vpop.f32.mrb[2].mxu0 }
 0x112   :  { %v127_v41 = vadd.f32 %v483_v36, %v126_v40  ;;  %v530_v42 = vpop.f32.mrb[3].mxu0  ;;  %592 = vtanh.f32 %v124_v38 }
 0x114   :  { %594 = vtanh.f32 %v127_v41 }
 0x11c   :  { %v593_v43 = vpop.eup %592 }
 0x11e   :  { %v595_v44 = vpop.eup %594 }
 0x11f   :  { %v132_v45 = vpack.c.bf16 %v595_v44, %v593_v43 }
 0x121   :  { %380 = vmatmul.mubr.bf16.vlgmr.msra.gmra.mrb[0].mxu1 %v132_v45  ;;  %423 = vmatmul.mubr.bf16.vlgmr.msra.gmra.mrb[4].mxu0 %v132_v45 }
 0x1f4   :  { %v381_v55 = vpop.f32.mrb[0].mxu1  ;;  %v424_v56 = vpop.f32.mrb[4].mxu0 }
 0x1f5   :  { %v383_v59 = vpop.f32.mrb[1].mxu1  ;;  %v426_v60 = vpop.f32.mrb[5].mxu0  ;;  %v382_v63 = vadd.f32 %v381_v55, %v170_v53  ;;  %v425_v0 = vadd.f32 %v424_v56, %v178_v54 }
 0x1f6   :  { %v385_v61 = vpop.f32.mrb[2].mxu1  ;;  %v428_v62 = vpop.f32.mrb[6].mxu0  ;;  %v384_v5 = vadd.f32 %v383_v59, %v174_v57  ;;  %v427_v6 = vadd.f32 %v426_v60, %v182_v58 }
 0x1f7   :  { %v386_v1 = vadd.f32 %v385_v61, %v170_v53  ;;  %v429_v2 = vadd.f32 %v428_v62, %v178_v54  ;;  %v387_v3 = vpop.f32.mrb[3].mxu1  ;;  %v430_v4 = vpop.f32.mrb[7].mxu0 }
 0x1f8   :  { %v388_v7 = vadd.f32 %v387_v3, %v174_v57  ;;  %v431_v8 = vadd.f32 %v430_v4, %v182_v58 }
 0x1f9   :  { %v433_v9 = vpack.c.bf16 %v386_v1, %v382_v63  ;;  %v435_v10 = vpack.c.bf16 %v429_v2, %v425_v0 }
 0x1fa   :  { %v434_v11 = vpack.c.bf16 %v388_v7, %v384_v5  ;;  %v436_v12 = vpack.c.bf16 %v431_v8, %v427_v6 }
 0x1fb   :  { %596 = vtanh.bf16 %v433_v9 }
 0x1fc   :  { %598 = vtanh.bf16 %v435_v10 }
 0x1fd   :  { %600 = vtanh.bf16 %v434_v11 }
 0x1fe   :  { %602 = vtanh.bf16 %v436_v12 }
 0x206   :  { %v597_v13 = vpop.eup %596 }
 0x207   :  { %v599_v14 = vpop.eup %598 }
 0x208   :  { %v601_v15 = vpop.eup %600 }
 0x209   :  { %v603_v16 = vpop.eup %602  ;;  %v519_v17 = vcombine.low %v597_v13, %v601_v15  ;;  %v521_v18 = vcombine.high %v597_v13, %v601_v15 }
 0x20a   :  { %v520_v19 = vcombine.low %v599_v14, %v603_v16  ;;  %v522_v20 = vcombine.high %v599_v14, %v603_v16 }
 0x20b   :  { %461 = vst [vmem:[#allocation8] sm:$0xff] %v519_v17  ;;  %463 = vst [vmem:[#allocation8 + $0x10] sm:$0xff] %v521_v18 }
 0x20c   :  { %462 = vst [vmem:[#allocation8 + $0x8] sm:$0xff] %v520_v19  ;;  %464 = vst [vmem:[#allocation8 + $0x18] sm:$0xff] %v522_v20 }
 0x20d   :  { %681 = shalt.err (!%p678_p0)
}
 0x20e   :  { %s682_s12 = scalar_lea.hbm %s811_s5, 512 }
 0x20f   :  { %p683_p1 = scmp.ne.s32.totalorder %s811_s5, %s682_s12  ;;  %p686_p2 = scmp.lt.u32.totalorder %s682_s12, %s811_s5 }
 0x211   :  { %p688_p3 = pnand %p686_p2, %p683_p1 }
 0x213   :  { %691 = shalt.err (!%p688_p3)
}
 0x214   :  { %476 = dma.vmem_to_hbm [thread:$0]  %s471_s4, 512, %s811_s5, [#allocation4], %s703_s0, %s703_s0, %s704_s21  }
 0x215   :  { %696 = dma.done.wait [#allocation4], 512  }
 0x216   :  { %697 = vsyncadd [#allocation4], 4294966784 }
 0x217   :  { %480 = vsyncpa [#allocation3], 1 }
 0x218   :  { %481 = vsyncpa [#allocation6], 1 }
 0x219   :  { %482 = vsyncpa [#allocation4], 1 }

</bundles_post_ra>
